<compile_context>
chip_gen: v5e
topology: v5e:2x2
jax: 0.10.0
libtpu: 0.0.40
codegen_flags: <defaults>
</compile_context>

<pallas_src>
import functools

import jax
import jax.numpy as jnp
import numpy as np
from jax import lax
from jax.experimental import pallas as pl
from jax.experimental.pallas import tpu as pltpu  # noqa: F401  (TPU backend)


# ----------------------------------------------------------------------------
# Pallas kernel: the entire DenseBlock1d, fused, one invocation
# ----------------------------------------------------------------------------
def dense_block_kernel(x_ref, keep_prev_ref, keep_next_ref, *refs,
                       c0, growth, num_layers):
    """Fused DenseBlock1d forward on an (N*L, C) slab resident in VMEM.

    refs = [s1_0, b1_0, w1_0, b2_0, w2_0, ..., s1_{n-1}, ..., w2_{n-1}, out]
    """
    o_ref = refs[-1]
    params = refs[:-1]

    # The output ref doubles as the growing feature slab (stays in VMEM).
    o_ref[:, :c0] = x_ref[...]

    keep_prev = keep_prev_ref[...]   # (rows, 1): 0 where row is first of its seq
    keep_next = keep_next_ref[...]   # (rows, 1): 0 where row is last of its seq

    for i in range(num_layers):
        s1, b1, w1, b2, w2 = params[5 * i:5 * i + 5]
        c_in = c0 + i * growth

        feat = o_ref[:, :c_in]                                    # (rows, c_in)

        # BatchNorm1 (folded to per-channel scale/shift) + ReLU.
        h = jnp.maximum(feat * s1[...] + b1[...], 0.0)

        # Conv1d(k=1) with BN2's scale pre-folded into w1, then BN2 shift+ReLU.
        y = jnp.dot(h, w1[...], preferred_element_type=jnp.float32)
        y = jnp.maximum(y + b2[...], 0.0)                         # (rows, B)

        # Conv1d(k=3, pad=1) as ONE (rows, 3B) @ (3B, G) MXU contraction.
        # Row rolls give the l-1 / l+1 taps; the keep-masks zero the taps that
        # would otherwise wrap across sequence (batch) boundaries.
        y_prev = jnp.roll(y, 1, axis=0) * keep_prev
        y_next = jnp.roll(y, -1, axis=0) * keep_next
        taps = jnp.concatenate([y_prev, y, y_next], axis=-1)      # (rows, 3B)
        new = jnp.dot(taps, w2[...], preferred_element_type=jnp.float32)

        # Dropout(p=0.7) is identity in eval mode.
        o_ref[:, c_in:c_in + growth] = new.astype(o_ref.dtype)


def dense_block_pallas(x_ncl, layer_params):
    """x_ncl: (N, C0, L) PyTorch NCL layout. Returns (N, C0 + n*G, L)."""
    N, C0, L = x_ncl.shape
    num_layers = len(layer_params)
    G = layer_params[0]["w2"].shape[1]
    C_total = C0 + num_layers * G
    rows = N * L

    # NCL -> (N*L, C): channels on lanes, batch*length folded onto sublanes.
    x2d = jnp.transpose(x_ncl, (0, 2, 1)).reshape(rows, C0)

    # Per-row keep-masks for the k=3 conv taps (zero across sequence edges).
    pos = jnp.arange(rows, dtype=jnp.int32) % L
    keep_prev = (pos != 0).astype(x_ncl.dtype).reshape(rows, 1)
    keep_next = (pos != L - 1).astype(x_ncl.dtype).reshape(rows, 1)

    flat_params = []
    for p in layer_params:
        flat_params += [p["scale1"], p["shift1"], p["w1"], p["shift2"], p["w2"]]

    kernel = functools.partial(dense_block_kernel, c0=C0, growth=G,
                               num_layers=num_layers)
    # No grid: the whole problem (a few KiB) lives in VMEM; one launch total.
    out2d = pl.pallas_call(
        kernel,
        out_shape=jax.ShapeDtypeStruct((rows, C_total), x_ncl.dtype),
    )(x2d, keep_prev, keep_next, *flat_params)

    return jnp.transpose(out2d.reshape(N, L, C_total), (0, 2, 1))   # back to NCL


# ----------------------------------------------------------------------------
# Parameter construction (deterministic, shapes from the PyTorch __init__)
# ----------------------------------------------------------------------------
def make_layer_params(key, c_in, bottleneck_factor, growth_rate, eps=1e-5):
    bottleneck = bottleneck_factor * growth_rate
    ks = jax.random.split(key, 10)

    # BatchNorm1d(c_in) params + running stats.
    gamma1 = 1.0 + 0.1 * jax.random.normal(ks[0], (c_in,), jnp.float32)
    beta1 = 0.1 * jax.random.normal(ks[1], (c_in,), jnp.float32)
    mean1 = 0.05 * jax.random.normal(ks[2], (c_in,), jnp.float32)
    var1 = 1.0 + 0.1 * jnp.abs(jax.random.normal(ks[3], (c_in,), jnp.float32))

    # Conv1d(c_in -> bottleneck, k=1, bias=False): weight (bottleneck, c_in, 1).
    conv1_w = jax.random.normal(ks[4], (bottleneck, c_in, 1), jnp.float32)
    conv1_w = conv1_w * (1.0 / jnp.sqrt(jnp.float32(c_in)))

    # BatchNorm1d(bottleneck).
    gamma2 = 1.0 + 0.1 * jax.random.normal(ks[5], (bottleneck,), jnp.float32)
    beta2 = 0.1 * jax.random.normal(ks[6], (bottleneck,), jnp.float32)
    mean2 = 0.05 * jax.random.normal(ks[7], (bottleneck,), jnp.float32)
    var2 = 1.0 + 0.1 * jnp.abs(
        jax.random.normal(ks[8], (bottleneck,), jnp.float32))

    # Conv1d(bottleneck -> growth, k=3, pad=1, bias=False): (growth, bneck, 3).
    conv2_w = jax.random.normal(ks[9], (growth_rate, bottleneck, 3),
                                jnp.float32)
    conv2_w = conv2_w * (1.0 / jnp.sqrt(jnp.float32(3 * bottleneck)))

    # Fold eval-mode BN into per-channel scale/shift.
    s1 = gamma1 / jnp.sqrt(var1 + eps)
    b1 = beta1 - mean1 * s1
    s2 = gamma2 / jnp.sqrt(var2 + eps)
    b2 = beta2 - mean2 * s2

    # Fold BN2's scale into the k=1 conv weight: (h @ w1) * s2 == h @ (w1 * s2).
    w1_folded = jnp.transpose(conv1_w[:, :, 0]) * s2[None, :]     # (c_in, bneck)

    # k=3 conv as one contraction: (3, bneck, G) -> (3*bneck, G), tap index as
    # the slow axis so it matches concat([y[l-1], y[l], y[l+1]], lanes).
    w2_flat = jnp.transpose(conv2_w, (2, 1, 0)).reshape(3 * bottleneck,
                                                        growth_rate)

    kernel_params = dict(
        scale1=s1.reshape(1, c_in),
        shift1=b1.reshape(1, c_in),
        w1=w1_folded,
        shift2=b2.reshape(1, bottleneck),
        w2=w2_flat,
    )
    torch_params = dict(gamma1=gamma1, beta1=beta1, mean1=mean1, var1=var1,
                        conv1_w=conv1_w, gamma2=gamma2, beta2=beta2,
                        mean2=mean2, var2=var2, conv2_w=conv2_w, eps=eps)
    return kernel_params, torch_params


# ----------------------------------------------------------------------------
# Pure-JAX (lax.conv) reference reproducing PyTorch eval-mode semantics (NCL)
# ----------------------------------------------------------------------------
def reference_layer(x_ncl, tp):
    eps = tp["eps"]
    x = (x_ncl - tp["mean1"][None, :, None]) / jnp.sqrt(
        tp["var1"][None, :, None] + eps)
    x = x * tp["gamma1"][None, :, None] + tp["beta1"][None, :, None]
    x = jnp.maximum(x, 0.0)
    x = lax.conv_general_dilated(x, tp["conv1_w"], (1,), "VALID",
                                 dimension_numbers=("NCH", "OIH", "NCH"))
    x = (x - tp["mean2"][None, :, None]) / jnp.sqrt(
        tp["var2"][None, :, None] + eps)
    x = x * tp["gamma2"][None, :, None] + tp["beta2"][None, :, None]
    x = jnp.maximum(x, 0.0)
    x = lax.conv_general_dilated(x, tp["conv2_w"], (1,), ((1, 1),),
                                 dimension_numbers=("NCH", "OIH", "NCH"))
    return x  # dropout is identity in eval


def reference_block(x_ncl, torch_params):
    feats = [x_ncl]
    for tp in torch_params:
        cat = jnp.concatenate(feats, axis=1)
        feats.append(reference_layer(cat, tp))
    return jnp.concatenate(feats, axis=1)


# ----------------------------------------------------------------------------
if __name__ == "__main__":
    N, C0, L = 2, 16, 16
    bottleneck_factor, growth_rate = 4, 8

    root = jax.random.PRNGKey(0)
    kx, kparams = jax.random.split(root)
    x = jax.random.normal(kx, (N, C0, L), jnp.float32)     # PyTorch NCL input

    layer_keys = jax.random.split(kparams, 4)
    kernel_params, torch_params = [], []
    for i in range(4):
        c_in = C0 + i * growth_rate
        kp_i, tp_i = make_layer_params(layer_keys[i], c_in,
                                       bottleneck_factor, growth_rate)
        kernel_params.append(kp_i)
        torch_params.append(tp_i)

    fwd = jax.jit(dense_block_pallas)
    out = jax.block_until_ready(fwd(x, kernel_params))

    expected_channels = C0 + 4 * growth_rate
    assert out.shape == (N, expected_channels, L), out.shape

    ref = jax.block_until_ready(reference_block(x, torch_params))
    np.testing.assert_allclose(np.asarray(out), np.asarray(ref),
                               rtol=1e-4, atol=1e-4)

    print("KERNEL_OK")
</pallas_src>

<mosaic_0001>
module attributes {stable_mosaic.version = 11 : i64} {
  func.func @dense_block_kernel(%arg0: memref<32x16xf32, #tpu.memory_space<vmem>>, %arg1: memref<32x1xf32, #tpu.memory_space<vmem>>, %arg2: memref<32x1xf32, #tpu.memory_space<vmem>>, %arg3: memref<1x16xf32, #tpu.memory_space<vmem>>, %arg4: memref<1x16xf32, #tpu.memory_space<vmem>>, %arg5: memref<16x32xf32, #tpu.memory_space<vmem>>, %arg6: memref<1x32xf32, #tpu.memory_space<vmem>>, %arg7: memref<96x8xf32, #tpu.memory_space<vmem>>, %arg8: memref<1x24xf32, #tpu.memory_space<vmem>>, %arg9: memref<1x24xf32, #tpu.memory_space<vmem>>, %arg10: memref<24x32xf32, #tpu.memory_space<vmem>>, %arg11: memref<1x32xf32, #tpu.memory_space<vmem>>, %arg12: memref<96x8xf32, #tpu.memory_space<vmem>>, %arg13: memref<1x32xf32, #tpu.memory_space<vmem>>, %arg14: memref<1x32xf32, #tpu.memory_space<vmem>>, %arg15: memref<32x32xf32, #tpu.memory_space<vmem>>, %arg16: memref<1x32xf32, #tpu.memory_space<vmem>>, %arg17: memref<96x8xf32, #tpu.memory_space<vmem>>, %arg18: memref<1x40xf32, #tpu.memory_space<vmem>>, %arg19: memref<1x40xf32, #tpu.memory_space<vmem>>, %arg20: memref<40x32xf32, #tpu.memory_space<vmem>>, %arg21: memref<1x32xf32, #tpu.memory_space<vmem>>, %arg22: memref<96x8xf32, #tpu.memory_space<vmem>>, %arg23: memref<32x48xf32, #tpu.memory_space<vmem>>) attributes {dimension_semantics = [], scalar_prefetch = 0 : i64, scratch_operands = 0 : i64, tpu.core_type = #tpu.core_type<tc>} {
    %c0 = arith.constant 0 : index
    %c0_0 = arith.constant 0 : index
    %0 = vector.load %arg0[%c0, %c0_0] : memref<32x16xf32, #tpu.memory_space<vmem>>, vector<32x16xf32>
    %c0_1 = arith.constant 0 : index
    %c0_2 = arith.constant 0 : index
    %1 = vector.load %arg23[%c0_1, %c0_2] : memref<32x48xf32, #tpu.memory_space<vmem>>, vector<32x16xf32>
    tpu.vector_store %arg23[%c0_1, %c0_2], %0 {strides = array<i32>} : memref<32x48xf32, #tpu.memory_space<vmem>>, vector<32x16xf32>,
    %c0_3 = arith.constant 0 : index
    %c0_4 = arith.constant 0 : index
    %2 = vector.load %arg1[%c0_3, %c0_4] : memref<32x1xf32, #tpu.memory_space<vmem>>, vector<32x1xf32>
    %c0_5 = arith.constant 0 : index
    %c0_6 = arith.constant 0 : index
    %3 = vector.load %arg2[%c0_5, %c0_6] : memref<32x1xf32, #tpu.memory_space<vmem>>, vector<32x1xf32>
    %c0_7 = arith.constant 0 : index
    %c0_8 = arith.constant 0 : index
    %4 = vector.load %arg23[%c0_7, %c0_8] : memref<32x48xf32, #tpu.memory_space<vmem>>, vector<32x16xf32>
    %c0_9 = arith.constant 0 : index
    %c0_10 = arith.constant 0 : index
    %5 = vector.load %arg3[%c0_9, %c0_10] : memref<1x16xf32, #tpu.memory_space<vmem>>, vector<1x16xf32>
    %6 = vector.broadcast %5 : vector<1x16xf32> to vector<32x16xf32>
    %7 = arith.mulf %4, %6 : vector<32x16xf32>
    %c0_11 = arith.constant 0 : index
    %c0_12 = arith.constant 0 : index
    %8 = vector.load %arg4[%c0_11, %c0_12] : memref<1x16xf32, #tpu.memory_space<vmem>>, vector<1x16xf32>
    %9 = vector.broadcast %8 : vector<1x16xf32> to vector<32x16xf32>
    %10 = arith.addf %7, %9 : vector<32x16xf32>
    %cst = arith.constant 0.000000e+00 : f32
    %11 = vector.broadcast %cst : f32 to vector<32x16xf32>
    %12 = arith.maximumf %10, %11 : vector<32x16xf32>
    %c0_13 = arith.constant 0 : index
    %c0_14 = arith.constant 0 : index
    %13 = vector.load %arg5[%c0_13, %c0_14] : memref<16x32xf32, #tpu.memory_space<vmem>>, vector<16x32xf32>
    %cst_15 = arith.constant dense<0.000000e+00> : vector<32x32xf32>
    %14 = tpu.matmul %12, %13, %cst_15 {dimension_numbers = #tpu.dot_dimension_numbers<[1], [0], [0], [1], [0, 0, 1, 1], [], []>} : vector<32x16xf32>, vector<16x32xf32>, vector<32x32xf32> -> vector<32x32xf32>
    %c0_16 = arith.constant 0 : index
    %c0_17 = arith.constant 0 : index
    %15 = vector.load %arg6[%c0_16, %c0_17] : memref<1x32xf32, #tpu.memory_space<vmem>>, vector<1x32xf32>
    %16 = vector.broadcast %15 : vector<1x32xf32> to vector<32x32xf32>
    %17 = arith.addf %14, %16 : vector<32x32xf32>
    %cst_18 = arith.constant 0.000000e+00 : f32
    %18 = vector.broadcast %cst_18 : f32 to vector<32x32xf32>
    %19 = arith.maximumf %17, %18 : vector<32x32xf32>
    %20 = vector.extract_strided_slice %19 {offsets = [31, 0], sizes = [1, 32], strides = [1, 1]} : vector<32x32xf32> to vector<1x32xf32>
    %21 = vector.extract_strided_slice %19 {offsets = [0, 0], sizes = [31, 32], strides = [1, 1]} : vector<32x32xf32> to vector<31x32xf32>
    %22 = tpu.concatenate %20, %21 in 0 : vector<1x32xf32>, vector<31x32xf32> -> vector<32x32xf32>
    %23 = vector.broadcast %2 : vector<32x1xf32> to vector<32x32xf32>
    %24 = arith.mulf %22, %23 : vector<32x32xf32>
    %25 = vector.extract_strided_slice %19 {offsets = [1, 0], sizes = [31, 32], strides = [1, 1]} : vector<32x32xf32> to vector<31x32xf32>
    %26 = vector.extract_strided_slice %19 {offsets = [0, 0], sizes = [1, 32], strides = [1, 1]} : vector<32x32xf32> to vector<1x32xf32>
    %27 = tpu.concatenate %25, %26 in 0 : vector<31x32xf32>, vector<1x32xf32> -> vector<32x32xf32>
    %28 = vector.broadcast %3 : vector<32x1xf32> to vector<32x32xf32>
    %29 = arith.mulf %27, %28 : vector<32x32xf32>
    %30 = tpu.concatenate %24, %19, %29 in 1 : vector<32x32xf32>, vector<32x32xf32>, vector<32x32xf32> -> vector<32x96xf32>
    %c0_19 = arith.constant 0 : index
    %c0_20 = arith.constant 0 : index
    %31 = vector.load %arg7[%c0_19, %c0_20] : memref<96x8xf32, #tpu.memory_space<vmem>>, vector<96x8xf32>
    %cst_21 = arith.constant dense<0.000000e+00> : vector<32x8xf32>
    %32 = tpu.matmul %30, %31, %cst_21 {dimension_numbers = #tpu.dot_dimension_numbers<[1], [0], [0], [1], [0, 0, 1, 1], [], []>} : vector<32x96xf32>, vector<96x8xf32>, vector<32x8xf32> -> vector<32x8xf32>
    %c0_22 = arith.constant 0 : index
    %c16 = arith.constant 16 : index
    %33 = vector.load %arg23[%c0_22, %c16] : memref<32x48xf32, #tpu.memory_space<vmem>>, vector<32x8xf32>
    tpu.vector_store %arg23[%c0_22, %c16], %32 {strides = array<i32>} : memref<32x48xf32, #tpu.memory_space<vmem>>, vector<32x8xf32>,
    %c0_23 = arith.constant 0 : index
    %c0_24 = arith.constant 0 : index
    %34 = vector.load %arg23[%c0_23, %c0_24] : memref<32x48xf32, #tpu.memory_space<vmem>>, vector<32x24xf32>
    %c0_25 = arith.constant 0 : index
    %c0_26 = arith.constant 0 : index
    %35 = vector.load %arg8[%c0_25, %c0_26] : memref<1x24xf32, #tpu.memory_space<vmem>>, vector<1x24xf32>
    %36 = vector.broadcast %35 : vector<1x24xf32> to vector<32x24xf32>
    %37 = arith.mulf %34, %36 : vector<32x24xf32>
    %c0_27 = arith.constant 0 : index
    %c0_28 = arith.constant 0 : index
    %38 = vector.load %arg9[%c0_27, %c0_28] : memref<1x24xf32, #tpu.memory_space<vmem>>, vector<1x24xf32>
    %39 = vector.broadcast %38 : vector<1x24xf32> to vector<32x24xf32>
    %40 = arith.addf %37, %39 : vector<32x24xf32>
    %cst_29 = arith.constant 0.000000e+00 : f32
    %41 = vector.broadcast %cst_29 : f32 to vector<32x24xf32>
    %42 = arith.maximumf %40, %41 : vector<32x24xf32>
    %c0_30 = arith.constant 0 : index
    %c0_31 = arith.constant 0 : index
    %43 = vector.load %arg10[%c0_30, %c0_31] : memref<24x32xf32, #tpu.memory_space<vmem>>, vector<24x32xf32>
    %cst_32 = arith.constant dense<0.000000e+00> : vector<32x32xf32>
    %44 = tpu.matmul %42, %43, %cst_32 {dimension_numbers = #tpu.dot_dimension_numbers<[1], [0], [0], [1], [0, 0, 1, 1], [], []>} : vector<32x24xf32>, vector<24x32xf32>, vector<32x32xf32> -> vector<32x32xf32>
    %c0_33 = arith.constant 0 : index
    %c0_34 = arith.constant 0 : index
    %45 = vector.load %arg11[%c0_33, %c0_34] : memref<1x32xf32, #tpu.memory_space<vmem>>, vector<1x32xf32>
    %46 = vector.broadcast %45 : vector<1x32xf32> to vector<32x32xf32>
    %47 = arith.addf %44, %46 : vector<32x32xf32>
    %cst_35 = arith.constant 0.000000e+00 : f32
    %48 = vector.broadcast %cst_35 : f32 to vector<32x32xf32>
    %49 = arith.maximumf %47, %48 : vector<32x32xf32>
    %50 = vector.extract_strided_slice %49 {offsets = [31, 0], sizes = [1, 32], strides = [1, 1]} : vector<32x32xf32> to vector<1x32xf32>
    %51 = vector.extract_strided_slice %49 {offsets = [0, 0], sizes = [31, 32], strides = [1, 1]} : vector<32x32xf32> to vector<31x32xf32>
    %52 = tpu.concatenate %50, %51 in 0 : vector<1x32xf32>, vector<31x32xf32> -> vector<32x32xf32>
    %53 = vector.broadcast %2 : vector<32x1xf32> to vector<32x32xf32>
    %54 = arith.mulf %52, %53 : vector<32x32xf32>
    %55 = vector.extract_strided_slice %49 {offsets = [1, 0], sizes = [31, 32], strides = [1, 1]} : vector<32x32xf32> to vector<31x32xf32>
    %56 = vector.extract_strided_slice %49 {offsets = [0, 0], sizes = [1, 32], strides = [1, 1]} : vector<32x32xf32> to vector<1x32xf32>
    %57 = tpu.concatenate %55, %56 in 0 : vector<31x32xf32>, vector<1x32xf32> -> vector<32x32xf32>
    %58 = vector.broadcast %3 : vector<32x1xf32> to vector<32x32xf32>
    %59 = arith.mulf %57, %58 : vector<32x32xf32>
    %60 = tpu.concatenate %54, %49, %59 in 1 : vector<32x32xf32>, vector<32x32xf32>, vector<32x32xf32> -> vector<32x96xf32>
    %c0_36 = arith.constant 0 : index
    %c0_37 = arith.constant 0 : index
    %61 = vector.load %arg12[%c0_36, %c0_37] : memref<96x8xf32, #tpu.memory_space<vmem>>, vector<96x8xf32>
    %cst_38 = arith.constant dense<0.000000e+00> : vector<32x8xf32>
    %62 = tpu.matmul %60, %61, %cst_38 {dimension_numbers = #tpu.dot_dimension_numbers<[1], [0], [0], [1], [0, 0, 1, 1], [], []>} : vector<32x96xf32>, vector<96x8xf32>, vector<32x8xf32> -> vector<32x8xf32>
    %c0_39 = arith.constant 0 : index
    %c24 = arith.constant 24 : index
    %63 = vector.load %arg23[%c0_39, %c24] : memref<32x48xf32, #tpu.memory_space<vmem>>, vector<32x8xf32>
    tpu.vector_store %arg23[%c0_39, %c24], %62 {strides = array<i32>} : memref<32x48xf32, #tpu.memory_space<vmem>>, vector<32x8xf32>,
    %c0_40 = arith.constant 0 : index
    %c0_41 = arith.constant 0 : index
    %64 = vector.load %arg23[%c0_40, %c0_41] : memref<32x48xf32, #tpu.memory_space<vmem>>, vector<32x32xf32>
    %c0_42 = arith.constant 0 : index
    %c0_43 = arith.constant 0 : index
    %65 = vector.load %arg13[%c0_42, %c0_43] : memref<1x32xf32, #tpu.memory_space<vmem>>, vector<1x32xf32>
    %66 = vector.broadcast %65 : vector<1x32xf32> to vector<32x32xf32>
    %67 = arith.mulf %64, %66 : vector<32x32xf32>
    %c0_44 = arith.constant 0 : index
    %c0_45 = arith.constant 0 : index
    %68 = vector.load %arg14[%c0_44, %c0_45] : memref<1x32xf32, #tpu.memory_space<vmem>>, vector<1x32xf32>
    %69 = vector.broadcast %68 : vector<1x32xf32> to vector<32x32xf32>
    %70 = arith.addf %67, %69 : vector<32x32xf32>
    %cst_46 = arith.constant 0.000000e+00 : f32
    %71 = vector.broadcast %cst_46 : f32 to vector<32x32xf32>
    %72 = arith.maximumf %70, %71 : vector<32x32xf32>
    %c0_47 = arith.constant 0 : index
    %c0_48 = arith.constant 0 : index
    %73 = vector.load %arg15[%c0_47, %c0_48] : memref<32x32xf32, #tpu.memory_space<vmem>>, vector<32x32xf32>
    %cst_49 = arith.constant dense<0.000000e+00> : vector<32x32xf32>
    %74 = tpu.matmul %72, %73, %cst_49 {dimension_numbers = #tpu.dot_dimension_numbers<[1], [0], [0], [1], [0, 0, 1, 1], [], []>} : vector<32x32xf32>, vector<32x32xf32>, vector<32x32xf32> -> vector<32x32xf32>
    %c0_50 = arith.constant 0 : index
    %c0_51 = arith.constant 0 : index
    %75 = vector.load %arg16[%c0_50, %c0_51] : memref<1x32xf32, #tpu.memory_space<vmem>>, vector<1x32xf32>
    %76 = vector.broadcast %75 : vector<1x32xf32> to vector<32x32xf32>
    %77 = arith.addf %74, %76 : vector<32x32xf32>
    %cst_52 = arith.constant 0.000000e+00 : f32
    %78 = vector.broadcast %cst_52 : f32 to vector<32x32xf32>
    %79 = arith.maximumf %77, %78 : vector<32x32xf32>
    %80 = vector.extract_strided_slice %79 {offsets = [31, 0], sizes = [1, 32], strides = [1, 1]} : vector<32x32xf32> to vector<1x32xf32>
    %81 = vector.extract_strided_slice %79 {offsets = [0, 0], sizes = [31, 32], strides = [1, 1]} : vector<32x32xf32> to vector<31x32xf32>
    %82 = tpu.concatenate %80, %81 in 0 : vector<1x32xf32>, vector<31x32xf32> -> vector<32x32xf32>
    %83 = vector.broadcast %2 : vector<32x1xf32> to vector<32x32xf32>
    %84 = arith.mulf %82, %83 : vector<32x32xf32>
    %85 = vector.extract_strided_slice %79 {offsets = [1, 0], sizes = [31, 32], strides = [1, 1]} : vector<32x32xf32> to vector<31x32xf32>
    %86 = vector.extract_strided_slice %79 {offsets = [0, 0], sizes = [1, 32], strides = [1, 1]} : vector<32x32xf32> to vector<1x32xf32>
    %87 = tpu.concatenate %85, %86 in 0 : vector<31x32xf32>, vector<1x32xf32> -> vector<32x32xf32>
    %88 = vector.broadcast %3 : vector<32x1xf32> to vector<32x32xf32>
    %89 = arith.mulf %87, %88 : vector<32x32xf32>
    %90 = tpu.concatenate %84, %79, %89 in 1 : vector<32x32xf32>, vector<32x32xf32>, vector<32x32xf32> -> vector<32x96xf32>
    %c0_53 = arith.constant 0 : index
    %c0_54 = arith.constant 0 : index
    %91 = vector.load %arg17[%c0_53, %c0_54] : memref<96x8xf32, #tpu.memory_space<vmem>>, vector<96x8xf32>
    %cst_55 = arith.constant dense<0.000000e+00> : vector<32x8xf32>
    %92 = tpu.matmul %90, %91, %cst_55 {dimension_numbers = #tpu.dot_dimension_numbers<[1], [0], [0], [1], [0, 0, 1, 1], [], []>} : vector<32x96xf32>, vector<96x8xf32>, vector<32x8xf32> -> vector<32x8xf32>
    %c0_56 = arith.constant 0 : index
    %c32 = arith.constant 32 : index
    %93 = vector.load %arg23[%c0_56, %c32] : memref<32x48xf32, #tpu.memory_space<vmem>>, vector<32x8xf32>
    tpu.vector_store %arg23[%c0_56, %c32], %92 {strides = array<i32>} : memref<32x48xf32, #tpu.memory_space<vmem>>, vector<32x8xf32>,
    %c0_57 = arith.constant 0 : index
    %c0_58 = arith.constant 0 : index
    %94 = vector.load %arg23[%c0_57, %c0_58] : memref<32x48xf32, #tpu.memory_space<vmem>>, vector<32x40xf32>
    %c0_59 = arith.constant 0 : index
    %c0_60 = arith.constant 0 : index
    %95 = vector.load %arg18[%c0_59, %c0_60] : memref<1x40xf32, #tpu.memory_space<vmem>>, vector<1x40xf32>
    %96 = vector.broadcast %95 : vector<1x40xf32> to vector<32x40xf32>
    %97 = arith.mulf %94, %96 : vector<32x40xf32>
    %c0_61 = arith.constant 0 : index
    %c0_62 = arith.constant 0 : index
    %98 = vector.load %arg19[%c0_61, %c0_62] : memref<1x40xf32, #tpu.memory_space<vmem>>, vector<1x40xf32>
    %99 = vector.broadcast %98 : vector<1x40xf32> to vector<32x40xf32>
    %100 = arith.addf %97, %99 : vector<32x40xf32>
    %cst_63 = arith.constant 0.000000e+00 : f32
    %101 = vector.broadcast %cst_63 : f32 to vector<32x40xf32>
    %102 = arith.maximumf %100, %101 : vector<32x40xf32>
    %c0_64 = arith.constant 0 : index
    %c0_65 = arith.constant 0 : index
    %103 = vector.load %arg20[%c0_64, %c0_65] : memref<40x32xf32, #tpu.memory_space<vmem>>, vector<40x32xf32>
    %cst_66 = arith.constant dense<0.000000e+00> : vector<32x32xf32>
    %104 = tpu.matmul %102, %103, %cst_66 {dimension_numbers = #tpu.dot_dimension_numbers<[1], [0], [0], [1], [0, 0, 1, 1], [], []>} : vector<32x40xf32>, vector<40x32xf32>, vector<32x32xf32> -> vector<32x32xf32>
    %c0_67 = arith.constant 0 : index
    %c0_68 = arith.constant 0 : index
    %105 = vector.load %arg21[%c0_67, %c0_68] : memref<1x32xf32, #tpu.memory_space<vmem>>, vector<1x32xf32>
    %106 = vector.broadcast %105 : vector<1x32xf32> to vector<32x32xf32>
    %107 = arith.addf %104, %106 : vector<32x32xf32>
    %cst_69 = arith.constant 0.000000e+00 : f32
    %108 = vector.broadcast %cst_69 : f32 to vector<32x32xf32>
    %109 = arith.maximumf %107, %108 : vector<32x32xf32>
    %110 = vector.extract_strided_slice %109 {offsets = [31, 0], sizes = [1, 32], strides = [1, 1]} : vector<32x32xf32> to vector<1x32xf32>
    %111 = vector.extract_strided_slice %109 {offsets = [0, 0], sizes = [31, 32], strides = [1, 1]} : vector<32x32xf32> to vector<31x32xf32>
    %112 = tpu.concatenate %110, %111 in 0 : vector<1x32xf32>, vector<31x32xf32> -> vector<32x32xf32>
    %113 = vector.broadcast %2 : vector<32x1xf32> to vector<32x32xf32>
    %114 = arith.mulf %112, %113 : vector<32x32xf32>
    %115 = vector.extract_strided_slice %109 {offsets = [1, 0], sizes = [31, 32], strides = [1, 1]} : vector<32x32xf32> to vector<31x32xf32>
    %116 = vector.extract_strided_slice %109 {offsets = [0, 0], sizes = [1, 32], strides = [1, 1]} : vector<32x32xf32> to vector<1x32xf32>
    %117 = tpu.concatenate %115, %116 in 0 : vector<31x32xf32>, vector<1x32xf32> -> vector<32x32xf32>
    %118 = vector.broadcast %3 : vector<32x1xf32> to vector<32x32xf32>
    %119 = arith.mulf %117, %118 : vector<32x32xf32>
    %120 = tpu.concatenate %114, %109, %119 in 1 : vector<32x32xf32>, vector<32x32xf32>, vector<32x32xf32> -> vector<32x96xf32>
    %c0_70 = arith.constant 0 : index
    %c0_71 = arith.constant 0 : index
    %121 = vector.load %arg22[%c0_70, %c0_71] : memref<96x8xf32, #tpu.memory_space<vmem>>, vector<96x8xf32>
    %cst_72 = arith.constant dense<0.000000e+00> : vector<32x8xf32>
    %122 = tpu.matmul %120, %121, %cst_72 {dimension_numbers = #tpu.dot_dimension_numbers<[1], [0], [0], [1], [0, 0, 1, 1], [], []>} : vector<32x96xf32>, vector<96x8xf32>, vector<32x8xf32> -> vector<32x8xf32>
    %c0_73 = arith.constant 0 : index
    %c40 = arith.constant 40 : index
    %123 = vector.load %arg23[%c0_73, %c40] : memref<32x48xf32, #tpu.memory_space<vmem>>, vector<32x8xf32>
    tpu.vector_store %arg23[%c0_73, %c40], %122 {strides = array<i32>} : memref<32x48xf32, #tpu.memory_space<vmem>>, vector<32x8xf32>,
    return
  }
}

</mosaic_0001>

<bundles_post_ra>
// kernel: dense_block_pallas.1
= control target key start
LH: loop header
LB: loop body
LE: loop exit
PB: predicated region body
PF: predicated region fallthrough
CT: control target
= control target key end

     0   :  { %s1765_s0 = inlined_call_operand.vmem [shape: f32[32,16], index: 0, kind: input, shape index: {}]   ;;  %s1766_s1 = inlined_call_operand.vmem [shape: f32[32,1], index: 1, kind: input, shape index: {}]   ;;  %s1767_s2 = inlined_call_operand.vmem [shape: f32[32,1], index: 2, kind: input, shape index: {}]   ;;  %s1768_s3 = inlined_call_operand.vmem [shape: f32[1,16], index: 3, kind: input, shape index: {}]   ;;  %s1769_s4 = inlined_call_operand.vmem [shape: f32[1,16], index: 4, kind: input, shape index: {}]   ;;  %s1770_s5 = inlined_call_operand.vmem [shape: f32[16,32], index: 5, kind: input, shape index: {}]   ;;  %s1771_s6 = inlined_call_operand.vmem [shape: f32[1,32], index: 6, kind: input, shape index: {}]   ;;  %s1772_s7 = inlined_call_operand.vmem [shape: f32[96,8], index: 7, kind: input, shape index: {}]   ;;  %s1773_s8 = inlined_call_operand.vmem [shape: f32[1,24], index: 8, kind: input, shape index: {}]   ;;  %s1774_s9 = inlined_call_operand.vmem [shape: f32[1,24], index: 9, kind: input, shape index: {}]   ;;  %s1775_s10 = inlined_call_operand.vmem [shape: f32[24,32], index: 10, kind: input, shape index: {}]   ;;  %s1776_s11 = inlined_call_operand.vmem [shape: f32[1,32], index: 11, kind: input, shape index: {}]   ;;  %s1777_s12 = inlined_call_operand.vmem [shape: f32[96,8], index: 12, kind: input, shape index: {}]   ;;  %s1778_s13 = inlined_call_operand.vmem [shape: f32[1,32], index: 13, kind: input, shape index: {}]   ;;  %s1779_s14 = inlined_call_operand.vmem [shape: f32[1,32], index: 14, kind: input, shape index: {}]   ;;  %s1780_s15 = inlined_call_operand.vmem [shape: f32[32,32], index: 15, kind: input, shape index: {}]   ;;  %s1781_s16 = inlined_call_operand.vmem [shape: f32[1,32], index: 16, kind: input, shape index: {}]   ;;  %s1782_s17 = inlined_call_operand.vmem [shape: f32[96,8], index: 17, kind: input, shape index: {}]   ;;  %s1783_s18 = inlined_call_operand.vmem [shape: f32[1,40], index: 18, kind: input, shape index: {}]   ;;  %s1784_s19 = inlined_call_operand.vmem [shape: f32[1,40], index: 19, kind: input, shape index: {}]   ;;  %s1785_s20 = inlined_call_operand.vmem [shape: f32[40,32], index: 20, kind: input, shape index: {}]   ;;  %s1786_s21 = inlined_call_operand.vmem [shape: f32[1,32], index: 21, kind: input, shape index: {}]   ;;  %s1787_s22 = inlined_call_operand.vmem [shape: f32[96,8], index: 22, kind: input, shape index: {}]   ;;  %s1788_s23 = inlined_call_operand.hbm [shape: f32[32,48], index: 23, kind: output, shape index: {}]  }
   0x1   :  { %1794 = sst [smem:[#allocation5_spill]] %s1765_s0 }
   0x2   :  { %1795 = sst [smem:[#allocation6_spill]] %s1766_s1 }
   0x3   :  { %1796 = sst [smem:[#allocation7_spill]] %s1767_s2 }
   0x4   :  { %1797 = sst [smem:[#allocation8_spill]] %s1768_s3 }
   0x5   :  { %1798 = sst [smem:[#allocation9_spill]] %s1769_s4 }
   0x6   :  { %1799 = sst [smem:[#allocation10_spill]] %s1770_s5 }
   0x7   :  { %1800 = sst [smem:[#allocation11_spill]] %s1771_s6 }
   0x8   :  { %1801 = sst [smem:[#allocation12_spill]] %s1772_s7 }
   0x9   :  { %s1802_s24 = sld [smem:[#allocation10_spill]]  ;;  %vm79_vm0 = vcmask 130048   ;;  %v1161_v6 = vmov 0  }
   0xa   :  { %s1803_s2 = sld [smem:[#allocation5_spill]]  ;;  %1121 = vset.pattern.permute.xlu1 %v1161_v6  ;;  %1120 = vset.pattern.permute.xlu0 %v1161_v6 }
   0xb   :  { %s1804_s30 = sld [smem:[#allocation7_spill]]  ;;  %1122 = vset.pattern.permute.xlu2 %v1161_v6 }
   0xc   :  { %s1805_s5 = sld [smem:[#allocation8_spill]] }
   0xd   :  { %s1806_s27 = sld [smem:[#allocation9_spill]] }
   0xe   :  { %s1807_s0 = sld [smem:[#allocation6_spill]] }
   0xf   :  { %v117_v0 = vld [vmem:[%s1802_s24 + $0x8] sm:$0xff]  ;;  %v116_v1 = vld [vmem:[%s1802_s24] sm:$0xff] }
  0x10   :  { %v75_v2 = vld [vmem:[%s1803_s2] sm:$0xff]  ;;  %148 = vmatpush.msra.mxu0 %v117_v0  ;;  %v76_v3 = vld [vmem:[%s1803_s2 + $0x8] sm:$0xff]  ;;  %v77_v4 = vld [vmem:[%s1803_s2 + $0x10] sm:$0xff] }
  0x11   :  { %v78_v5 = vld [vmem:[%s1803_s2 + $0x18] sm:$0xff]  ;;  %80 = vst.msk [vmem:[#allocation2] sm:$0xff] %vm79_vm0, %v75_v2  ;;  %v90_v7 = vld [vmem:[%s1804_s30 + $0x10] sm:$0xff]  ;;  %v88_v9 = vld [vmem:[%s1804_s30] sm:$0xff] }
  0x12   :  { %81 = vst.msk [vmem:[#allocation2 + $0x8] sm:$0xff] %vm79_vm0, %v76_v3  ;;  %149 = vmatpush.msra.mxu0 %v116_v1  ;;  %v1123_v8 = vld [vmem:[%s1805_s5] ss:$0 sm:$0xff]  ;;  %235 = vperm.xlu1 %1121, %v90_v7   ;;  %v91_v12 = vld [vmem:[%s1804_s30 + $0x18] sm:$0xff]  ;;  %v89_v16 = vld [vmem:[%s1804_s30 + $0x8] sm:$0xff] }
  0x13   :  { %82 = vst.msk [vmem:[#allocation2 + $0x10] sm:$0xff] %vm79_vm0, %v77_v4  ;;  %225 = vperm.xlu0 %1120, %v88_v9   ;;  %v1124_v10 = vld [vmem:[%s1806_s27] ss:$0 sm:$0xff] }
  0x14   :  { %83 = vst.msk [vmem:[#allocation2 + $0x18] sm:$0xff] %vm79_vm0, %v78_v5  ;;  %v84_v13 = vld [vmem:[%s1807_s0] sm:$0xff] }
  0x15   :  { %187 = vperm.xlu2 %1122, %v84_v13  }
  0x18   :  { %v92_v11 = vld [vmem:[#allocation2] sm:$0xff] }
  0x19   :  { %v100_v14 = vmul.f32 %v1123_v8, %v92_v11  ;;  %v93_v15 = vld [vmem:[#allocation2 + $0x8] sm:$0xff] }
  0x1a   :  { %28 = vsyncpa [#allocation3], 0  ;;  %v101_v18 = vmul.f32 %v1123_v8, %v93_v15  ;;  %240 = vperm.xlu1 %1121, %v91_v12   ;;  %v94_v21 = vld [vmem:[#allocation2 + $0x10] sm:$0xff]  ;;  %v85_v22 = vld [vmem:[%s1807_s0 + $0x8] sm:$0xff]  ;;  %s1808_s7 = sld [smem:[#allocation11_spill]]  ;;  %s1162_s28 = smov 32  }
  0x1b   :  { %v108_v17 = vadd.f32 %v1124_v10, %v100_v14  ;;  %230 = vperm.xlu0 %1120, %v89_v16   ;;  %v102_v24 = vmul.f32 %v1123_v8, %v94_v21  ;;  %v95_v26 = vld [vmem:[#allocation2 + $0x18] sm:$0xff]  ;;  %v86_v27 = vld [vmem:[%s1807_s0 + $0x10] sm:$0xff]  ;;  %vm173_vm1 = vcmask 1040384   ;;  %vm209_vm2 = vcmask 1046528   ;;  %s1163_s29 = smov 64   ;;  %s1809_s4 = sld [smem:[#allocation12_spill]] }
  0x1c   :  { %v109_v20 = vadd.f32 %v1124_v10, %v101_v18  ;;  %v103_v29 = vmul.f32 %v1123_v8, %v95_v26  ;;  %v87_v31 = vld [vmem:[%s1807_s0 + $0x18] sm:$0xff]  ;;  %vm275_vm3 = vcmask 261120   ;;  %vm280_vm4 = vcmask 523264   ;;  %s1167_s1 = smov [#allocation2]  }
  0x1d   :  { %v112_v19 = vmax.f32 %v108_v17, 0.0  ;;  %v110_v25 = vadd.f32 %v1124_v10, %v102_v24  ;;  %vm297_vm5 = vcmask 785408   ;;  %vm355_vm6 = vcmask 195712   ;;  %s1041_s26 = sshll.u32 %s1167_s1, 4  ;;  %s1042_s26 = int_to_ptr.vmem [resolvable:$true] %s1041_s26 }
  0x1e   :  { %v113_v23 = vmax.f32 %v109_v20, 0.0  ;;  %v111_v30 = vadd.f32 %v1124_v10, %v103_v29  ;;  %vm391_vm7 = vcmask 195584   ;;  %vm580_vm8 = vcmask 261312  }
  0x1f   :  { %1055 = vmatmul.msk.f32.vlgmr.msra.gmra.mxu0 %vm79_vm0, %v112_v19  ;;  %v114_v28 = vmax.f32 %v110_v25, 0.0  ;;  %vm805_vm9 = vcmask 326912   ;;  %vm843_vm10 = vcmask 326656   ;;  %vm1032_vm11 = vcmask 392512  }
  0x20   :  { %v115_v32 = vmax.f32 %v111_v30, 0.0  ;;  %v1125_v33 = vld [vmem:[%s1808_s7] ss:$0 sm:$0xff] }
  0x21   :  { %v296_v6 = vld [vmem:[%s1809_s4 + $0x58] sm:$0xff]  ;;  %v295_v7 = vld [vmem:[%s1809_s4 + $0x50] sm:$0xff]  ;;  %v294_v8 = vld [vmem:[%s1809_s4 + $0x48] sm:$0xff] }
  0x22   :  { %192 = vperm.xlu1 %1121, %v85_v22   ;;  %314 = vmatpush.msrb.mxu0 %v296_v6  ;;  %v293_v9 = vld [vmem:[%s1809_s4 + $0x40] sm:$0xff]  ;;  %v292_v10 = vld [vmem:[%s1809_s4 + $0x38] sm:$0xff]  ;;  %v291_v11 = vld [vmem:[%s1809_s4 + $0x30] sm:$0xff] }
  0x23   :  { %1087 = vmatpush.msra.mxu1 %v296_v6  ;;  %v290_v12 = vld [vmem:[%s1809_s4 + $0x28] sm:$0xff]  ;;  %v289_v13 = vld [vmem:[%s1809_s4 + $0x20] sm:$0xff]  ;;  %v288_v14 = vld [vmem:[%s1809_s4 + $0x18] sm:$0xff] }
  0x24   :  { %315 = vmatpush.msrb.mxu0 %v295_v7  ;;  %v287_v15 = vld [vmem:[%s1809_s4 + $0x10] sm:$0xff]  ;;  %v286_v16 = vld [vmem:[%s1809_s4 + $0x8] sm:$0xff]  ;;  %v285_v17 = vld [vmem:[%s1809_s4] sm:$0xff]  ;;  %s1164_s4 = smov 16  }
  0x25   :  { %1088 = vmatpush.msra.mxu1 %v295_v7 }
  0x26   :  { %316 = vmatpush.msrb.mxu0 %v294_v8 }
  0x27   :  { %1056 = vmatmul.msk.f32.gmra.mxu0 %vm79_vm0, %v113_v23  ;;  %1089 = vmatpush.msra.mxu1 %v294_v8 }
  0x28   :  { %317 = vmatpush.msrb.mxu0 %v293_v9 }
  0x29   :  { %1090 = vmatpush.msra.mxu1 %v293_v9 }
  0x2a   :  { %197 = vperm.xlu1 %1121, %v86_v27   ;;  %318 = vmatpush.msrb.mxu0 %v292_v10 }
  0x2b   :  { %1091 = vmatpush.msra.mxu1 %v292_v10 }
  0x2c   :  { %319 = vmatpush.msrb.mxu0 %v291_v11 }
  0x2d   :  { %1092 = vmatpush.msra.mxu1 %v291_v11  ;;  %v1128_v11 = vld [vmem:[%s1776_s11] ss:$0 sm:$0xff] }
  0x2e   :  { %320 = vmatpush.msrb.mxu0 %v290_v12 }
  0x2f   :  { %1057 = vmatmul.msk.f32.gmra.mxu0 %vm79_vm0, %v114_v28  ;;  %1093 = vmatpush.msra.mxu1 %v290_v12 }
  0x30   :  { %321 = vmatpush.msrb.mxu0 %v289_v13 }
  0x31   :  { %1094 = vmatpush.msra.mxu1 %v289_v13 }
  0x32   :  { %202 = vperm.xlu1 %1121, %v87_v31   ;;  %322 = vmatpush.msrb.mxu0 %v288_v14 }
  0x33   :  { %1095 = vmatpush.msra.mxu1 %v288_v14 }
  0x34   :  { %323 = vmatpush.msrb.mxu0 %v287_v15 }
  0x35   :  { %1096 = vmatpush.msra.mxu1 %v287_v15 }
  0x36   :  { %324 = vmatpush.msrb.mxu0 %v286_v16 }
  0x37   :  { %1058 = vmatmul.msk.f32.gmra.mxu0 %vm79_vm0, %v115_v32  ;;  %1097 = vmatpush.msra.mxu1 %v286_v16 }
  0x38   :  { %325 = vmatpush.msrb.mxu0 %v285_v17 }
  0x39   :  { %1098 = vmatpush.msra.mxu1 %v285_v17 }
  0x6f   :  { %v1419_v18 = vpop.permute.xlu2 %187 }
  0x84   :  { %v1368_v60 = vpop.permute.xlu1 %235 }
  0x85   :  { %v1350_v42 = vpop.permute.xlu0 %225 }
  0x8c   :  { %v1379_v4 = vpop.permute.xlu1 %240 }
  0x8d   :  { %v1360_v53 = vpop.permute.xlu0 %230 }
  0x94   :  { %v1422_v21 = vpop.permute.xlu1 %192 }
  0x9c   :  { %v151_v34 = vpop.f32.mrf.mxu0  ;;  %v1430_v29 = vpop.permute.xlu1 %197 }
  0x9d   :  { %v152_v35 = vadd.f32 %v1125_v33, %v151_v34 }
  0x9f   :  { %v163_v36 = vmax.f32 %v152_v35, 0.0 }
  0xa1   :  { %247 = vrot.lane.b32.xlu2 %v163_v36, %s1162_s28  ;;  %v174_v40 = vrot.slane %v163_v36, 7  ;;  %v210_v41 = vrot.slane %v163_v36, 1 }
  0xa4   :  { %v154_v37 = vpop.f32.mrf.mxu0  ;;  %v1439_v36 = vpop.permute.xlu1 %202 }
  0xa5   :  { %v155_v38 = vadd.f32 %v1125_v33, %v154_v37 }
  0xa7   :  { %v164_v39 = vmax.f32 %v155_v38, 0.0 }
  0xa9   :  { %v175_v43 = vrot.slane %v164_v39, 7  ;;  %v211_v44 = vrot.slane %v164_v39, 1  ;;  %249 = vrot.lane.b32.xlu2 %v164_v39, %s1162_s28 }
  0xab   :  { %v1354_v45 = vsel %vm173_vm1, %v174_v40, %v175_v43  ;;  %v212_v46 = vsel %vm209_vm2, %v210_v41, %v211_v44 }
  0xac   :  { %v157_v47 = vpop.f32.mrf.mxu0  ;;  %v243_v48 = vmul.f32 %v1350_v42, %v212_v46  ;;  %v206_v26 = vmul.f32 %v1422_v21, %v1354_v45 }
  0xad   :  { %v158_v49 = vadd.f32 %v1125_v33, %v157_v47  ;;  %v386_v47 = vld [vmem:[%s1775_s10 + $0x10] sm:$0xff] }
  0xae   :  { %263 = vrot.lane.b32.xlu0 %v243_v48, %s1163_s29  ;;  %v385_v48 = vld [vmem:[%s1775_s10 + $0x8] sm:$0xff]  ;;  %417 = vmatpush.msra.mxu2 %v386_v47 }
  0xaf   :  { %v165_v50 = vmax.f32 %v158_v49, 0.0  ;;  %v384_v49 = vld [vmem:[%s1775_s10] sm:$0xff] }
  0xb0   :  { %418 = vmatpush.msra.mxu2 %v385_v48 }
  0xb1   :  { %v177_v51 = vrot.slane %v165_v50, 7  ;;  %v213_v52 = vrot.slane %v165_v50, 1  ;;  %251 = vrot.lane.b32.xlu2 %v165_v50, %s1162_s28 }
  0xb2   :  { %419 = vmatpush.msra.mxu2 %v384_v49  ;;  %v522_v49 = vld [vmem:[%s1777_s12 + $0x58] sm:$0xff] }
  0xb3   :  { %v1363_v54 = vsel %vm173_vm1, %v175_v43, %v177_v51  ;;  %v214_v55 = vsel %vm209_vm2, %v211_v44, %v213_v52  ;;  %539 = vmatpush.msra.mxu3 %v522_v49 }
  0xb4   :  { %v160_v56 = vpop.f32.mrf.mxu0  ;;  %v244_v57 = vmul.f32 %v1360_v53, %v214_v55  ;;  %v207_v32 = vmul.f32 %v1430_v29, %v1363_v54 }
  0xb5   :  { %v161_v58 = vadd.f32 %v1125_v33, %v160_v56  ;;  %v1127_v56 = vld [vmem:[%s1774_s9] ss:$0 sm:$0xff] }
  0xb6   :  { %265 = vrot.lane.b32.xlu0 %v244_v57, %s1163_s29 }
  0xb7   :  { %v166_v59 = vmax.f32 %v161_v58, 0.0 }
  0xb9   :  { %v168_v61 = vrot.slane %v166_v59, 7  ;;  %v215_v62 = vrot.slane %v166_v59, 1  ;;  %253 = vrot.lane.b32.xlu2 %v166_v59, %s1162_s28 }
  0xbb   :  { %v1372_v63 = vsel %vm173_vm1, %v177_v51, %v168_v61  ;;  %v184_v0 = vsel %vm173_vm1, %v168_v61, %v174_v40  ;;  %v216_v1 = vsel %vm209_vm2, %v213_v52, %v215_v62  ;;  %v222_v3 = vsel %vm209_vm2, %v215_v62, %v210_v41  ;;  %v1126_v52 = vld [vmem:[%s1773_s8] ss:$0 sm:$0xff] }
  0xbc   :  { %v245_v2 = vmul.f32 %v1368_v60, %v216_v1  ;;  %v246_v5 = vmul.f32 %v1379_v4, %v222_v3  ;;  %v205_v20 = vmul.f32 %v1419_v18, %v184_v0  ;;  %v208_v38 = vmul.f32 %v1439_v36, %v1372_v63 }
  0xbe   :  { %267 = vrot.lane.b32.xlu0 %v245_v2, %s1163_s29 }
  0xc6   :  { %269 = vrot.lane.b32.xlu0 %v246_v5, %s1163_s29 }
  0xfb   :  { %v248_v19 = vpop.permute.xlu2 %247 }
  0xfc   :  { %v276_v22 = vsel %vm275_vm3, %v205_v20, %v248_v19 }
 0x103   :  { %v250_v24 = vpop.permute.xlu2 %249 }
 0x104   :  { %v277_v27 = vsel %vm275_vm3, %v206_v26, %v250_v24 }
 0x10b   :  { %v252_v31 = vpop.permute.xlu2 %251 }
 0x10c   :  { %v278_v33 = vsel %vm275_vm3, %v207_v32, %v252_v31 }
 0x113   :  { %v254_v37 = vpop.permute.xlu2 %253 }
 0x114   :  { %v279_v39 = vsel %vm275_vm3, %v208_v38, %v254_v37 }
 0x120   :  { %v264_v23 = vpop.permute.xlu0 %263 }
 0x121   :  { %v281_v25 = vsel %vm280_vm4, %v276_v22, %v264_v23 }
 0x122   :  { %1059 = vmatmul.msk.f32.vlgmr.msrb.gmra.mxu0 %vm297_vm5, %v281_v25 }
 0x128   :  { %v266_v28 = vpop.permute.xlu0 %265 }
 0x129   :  { %v282_v30 = vsel %vm280_vm4, %v277_v27, %v266_v28 }
 0x12a   :  { %1060 = vmatmul.msk.f32.vlgmr.msra.gmra.mxu1 %vm297_vm5, %v282_v30 }
 0x130   :  { %v268_v34 = vpop.permute.xlu0 %267 }
 0x131   :  { %v283_v35 = vsel %vm280_vm4, %v278_v33, %v268_v34 }
 0x132   :  { %1061 = vmatmul.msk.f32.gmra.mxu1 %vm297_vm5, %v283_v35 }
 0x138   :  { %v270_v40 = vpop.permute.xlu0 %269 }
 0x139   :  { %v284_v41 = vsel %vm280_vm4, %v279_v39, %v270_v40 }
 0x13a   :  { %1062 = vmatmul.msk.f32.gmra.mxu1 %vm297_vm5, %v284_v41 }
 0x19f   :  { %v327_v43 = vpop.f32.mrf.mxu0 }
 0x1a0   :  { %343 = vrot.lane.b32.xlu1 %v327_v43, %s1164_s4 }
 0x1a7   :  { %v330_v44 = vpop.f32.mrf.mxu1 }
 0x1a8   :  { %345 = vrot.lane.b32.xlu2 %v330_v44, %s1164_s4 }
 0x1af   :  { %v333_v45 = vpop.f32.mrf.mxu1 }
 0x1b0   :  { %347 = vrot.lane.b32.xlu0 %v333_v45, %s1164_s4 }
 0x1b7   :  { %v336_v46 = vpop.f32.mrf.mxu1 }
 0x1b8   :  { %349 = vrot.lane.b32.xlu1 %v336_v46, %s1164_s4 }
 0x202   :  { %v346_v50 = vpop.permute.xlu2 %345 }
 0x203   :  { %357 = vst.msk [vmem:[#allocation2 + $0x8] sm:$0xff] %vm355_vm6, %v346_v50  ;;  %v521_v50 = vld [vmem:[%s1777_s12 + $0x50] sm:$0xff] }
 0x204   :  { %540 = vmatpush.msra.mxu3 %v521_v50 }
 0x20a   :  { %v361_v57 = vld [vmem:[#allocation2 + $0x8] sm:$0xff] }
 0x20b   :  { %v369_v61 = vmul.f32 %v1126_v52, %v361_v57  ;;  %v515_v57 = vld [vmem:[%s1777_s12 + $0x20] sm:$0xff] }
 0x20d   :  { %v377_v63 = vadd.f32 %v1127_v56, %v369_v61  ;;  %v512_v61 = vld [vmem:[%s1777_s12 + $0x8] sm:$0xff] }
 0x20f   :  { %v381_v0 = vmax.f32 %v377_v63, 0.0 }
 0x212   :  { %v344_v51 = vpop.permute.xlu1 %343 }
 0x213   :  { %356 = vst.msk [vmem:[#allocation2] sm:$0xff] %vm355_vm6, %v344_v51  ;;  %v520_v51 = vld [vmem:[%s1777_s12 + $0x48] sm:$0xff] }
 0x214   :  { %541 = vmatpush.msra.mxu3 %v520_v51 }
 0x21a   :  { %v360_v54 = vld [vmem:[#allocation2] sm:$0xff] }
 0x21b   :  { %v368_v55 = vmul.f32 %v1126_v52, %v360_v54  ;;  %v518_v54 = vld [vmem:[%s1777_s12 + $0x38] sm:$0xff] }
 0x21d   :  { %v376_v58 = vadd.f32 %v1127_v56, %v368_v55  ;;  %v517_v55 = vld [vmem:[%s1777_s12 + $0x30] sm:$0xff] }
 0x21f   :  { %v380_v59 = vmax.f32 %v376_v58, 0.0  ;;  %v514_v58 = vld [vmem:[%s1777_s12 + $0x18] sm:$0xff] }
 0x221   :  { %1063 = vmatmul.msk.f32.vlgmr.msra.gmra.mxu2 %vm391_vm7, %v380_v59  ;;  %v513_v59 = vld [vmem:[%s1777_s12 + $0x10] sm:$0xff] }
 0x222   :  { %v348_v62 = vpop.permute.xlu0 %347 }
 0x223   :  { %358 = vst.msk [vmem:[#allocation2 + $0x10] sm:$0xff] %vm355_vm6, %v348_v62  ;;  %v511_v62 = vld [vmem:[%s1777_s12] sm:$0xff] }
 0x229   :  { %1064 = vmatmul.msk.f32.gmra.mxu2 %vm391_vm7, %v381_v0 }
 0x22a   :  { %v350_v1 = vpop.permute.xlu1 %349  ;;  %v362_v2 = vld [vmem:[#allocation2 + $0x10] sm:$0xff] }
 0x22b   :  { %359 = vst.msk [vmem:[#allocation2 + $0x18] sm:$0xff] %vm355_vm6, %v350_v1  ;;  %v370_v3 = vmul.f32 %v1126_v52, %v362_v2 }
 0x22d   :  { %v378_v5 = vadd.f32 %v1127_v56, %v370_v3 }
 0x22f   :  { %v382_v6 = vmax.f32 %v378_v5, 0.0 }
 0x231   :  { %1065 = vmatmul.msk.f32.gmra.mxu2 %vm391_vm7, %v382_v6 }
 0x232   :  { %v363_v7 = vld [vmem:[#allocation2 + $0x18] sm:$0xff] }
 0x233   :  { %v371_v8 = vmul.f32 %v1126_v52, %v363_v7  ;;  %v519_v52 = vld [vmem:[%s1777_s12 + $0x40] sm:$0xff] }
 0x234   :  { %542 = vmatpush.msra.mxu3 %v519_v52 }
 0x235   :  { %v379_v9 = vadd.f32 %v1127_v56, %v371_v8  ;;  %v516_v56 = vld [vmem:[%s1777_s12 + $0x28] sm:$0xff]  ;;  %s1165_s12 = smov 24  }
 0x236   :  { %543 = vmatpush.msra.mxu3 %v518_v54 }
 0x237   :  { %v383_v10 = vmax.f32 %v379_v9, 0.0 }
 0x238   :  { %544 = vmatpush.msra.mxu3 %v517_v55 }
 0x239   :  { %1066 = vmatmul.msk.f32.gmra.mxu2 %vm391_vm7, %v383_v10 }
 0x23a   :  { %545 = vmatpush.msra.mxu3 %v516_v56  ;;  %v1131_v56 = vld [vmem:[%s1781_s16] ss:$0 sm:$0xff] }
 0x23c   :  { %546 = vmatpush.msra.mxu3 %v515_v57 }
 0x23e   :  { %547 = vmatpush.msra.mxu3 %v514_v58 }
 0x240   :  { %548 = vmatpush.msra.mxu3 %v513_v59 }
 0x242   :  { %549 = vmatpush.msra.mxu3 %v512_v61 }
 0x244   :  { %550 = vmatpush.msra.mxu3 %v511_v62 }
 0x2a4   :  { %v421_v12 = vpop.f32.mrf.mxu2 }
 0x2a5   :  { %v422_v13 = vadd.f32 %v1128_v11, %v421_v12 }
 0x2a7   :  { %v433_v14 = vmax.f32 %v422_v13, 0.0 }
 0x2a9   :  { %475 = vrot.lane.b32.xlu2 %v433_v14, %s1162_s28  ;;  %v443_v19 = vrot.slane %v433_v14, 7  ;;  %v458_v20 = vrot.slane %v433_v14, 1 }
 0x2ac   :  { %v424_v15 = vpop.f32.mrf.mxu2 }
 0x2ad   :  { %v425_v16 = vadd.f32 %v1128_v11, %v424_v15 }
 0x2af   :  { %v434_v17 = vmax.f32 %v425_v16, 0.0 }
 0x2b1   :  { %v444_v22 = vrot.slane %v434_v17, 7  ;;  %v459_v23 = vrot.slane %v434_v17, 1  ;;  %477 = vrot.lane.b32.xlu1 %v434_v17, %s1162_s28 }
 0x2b3   :  { %v460_v24 = vsel %vm209_vm2, %v458_v20, %v459_v23  ;;  %v445_v25 = vsel %vm173_vm1, %v443_v19, %v444_v22 }
 0x2b4   :  { %v427_v26 = vpop.f32.mrf.mxu2  ;;  %v471_v27 = vmul.f32 %v460_v24, %v1350_v42  ;;  %v455_v6 = vmul.f32 %v445_v25, %v1422_v21 }
 0x2b5   :  { %v428_v28 = vadd.f32 %v1128_v11, %v427_v26  ;;  %v612_v26 = vld [vmem:[%s1780_s15 + $0x18] sm:$0xff] }
 0x2b6   :  { %491 = vrot.lane.b32.xlu0 %v471_v27, %s1163_s29  ;;  %v611_v27 = vld [vmem:[%s1780_s15 + $0x10] sm:$0xff]  ;;  %641 = vmatpush.msra.mxu0 %v612_v26 }
 0x2b7   :  { %v435_v30 = vmax.f32 %v428_v28, 0.0  ;;  %v610_v28 = vld [vmem:[%s1780_s15 + $0x8] sm:$0xff] }
 0x2b8   :  { %642 = vmatpush.msra.mxu0 %v611_v27 }
 0x2b9   :  { %v446_v31 = vrot.slane %v435_v30, 7  ;;  %v461_v32 = vrot.slane %v435_v30, 1 }
 0x2ba   :  { %643 = vmatpush.msra.mxu0 %v610_v28 }
 0x2bb   :  { %v462_v33 = vsel %vm209_vm2, %v459_v23, %v461_v32  ;;  %v447_v34 = vsel %vm173_vm1, %v444_v22, %v446_v31 }
 0x2bc   :  { %v430_v35 = vpop.f32.mrf.mxu2  ;;  %v472_v37 = vmul.f32 %v462_v33, %v1360_v53  ;;  %v1129_v33 = vld [vmem:[%s1778_s13] ss:$0 sm:$0xff] }
 0x2bd   :  { %v431_v38 = vadd.f32 %v1128_v11, %v430_v35  ;;  %v456_v11 = vmul.f32 %v447_v34, %v1430_v29 }
 0x2be   :  { %479 = vrot.lane.b32.xlu0 %v435_v30, %s1162_s28  ;;  %493 = vrot.lane.b32.xlu2 %v472_v37, %s1163_s29  ;;  %v609_v30 = vld [vmem:[%s1780_s15] sm:$0xff] }
 0x2bf   :  { %v436_v39 = vmax.f32 %v431_v38, 0.0  ;;  %644 = vmatpush.msra.mxu0 %v609_v30  ;;  %v1130_v37 = vld [vmem:[%s1779_s14] ss:$0 sm:$0xff]  ;;  %v747_v30 = vld [vmem:[%s1782_s17 + $0x58] sm:$0xff] }
 0x2c0   :  { %764 = vmatpush.msrb.mxu2 %v747_v30 }
 0x2c1   :  { %v438_v40 = vrot.slane %v436_v39, 7  ;;  %v463_v41 = vrot.slane %v436_v39, 1 }
 0x2c3   :  { %v470_v43 = vsel %vm209_vm2, %v463_v41, %v458_v20  ;;  %v464_v44 = vsel %vm209_vm2, %v461_v32, %v463_v41  ;;  %v453_v45 = vsel %vm173_vm1, %v438_v40, %v443_v19  ;;  %v448_v46 = vsel %vm173_vm1, %v446_v31, %v438_v40 }
 0x2c4   :  { %v474_v47 = vmul.f32 %v470_v43, %v1379_v4  ;;  %v473_v48 = vmul.f32 %v464_v44, %v1368_v60  ;;  %v454_v0 = vmul.f32 %v453_v45, %v1419_v18  ;;  %v457_v16 = vmul.f32 %v448_v46, %v1439_v36 }
 0x2c6   :  { %481 = vrot.lane.b32.xlu2 %v436_v39, %s1162_s28  ;;  %497 = vrot.lane.b32.xlu0 %v474_v47, %s1163_s29 }
 0x2c7   :  { %495 = vrot.lane.b32.xlu1 %v473_v48, %s1163_s29 }
 0x303   :  { %v476_v63 = vpop.permute.xlu2 %475 }
 0x304   :  { %v503_v1 = vsel %vm275_vm3, %v454_v0, %v476_v63 }
 0x318   :  { %v494_v8 = vpop.permute.xlu2 %493 }
 0x320   :  { %v482_v15 = vpop.permute.xlu2 %481 }
 0x321   :  { %v506_v19 = vsel %vm275_vm3, %v457_v16, %v482_v15 }
 0x323   :  { %v478_v5 = vpop.permute.xlu1 %477 }
 0x324   :  { %v504_v7 = vsel %vm275_vm3, %v455_v6, %v478_v5 }
 0x325   :  { %v508_v9 = vsel %vm280_vm4, %v504_v7, %v494_v8 }
 0x328   :  { %v492_v2 = vpop.permute.xlu0 %491 }
 0x329   :  { %v507_v3 = vsel %vm280_vm4, %v503_v1, %v492_v2 }
 0x32a   :  { %1067 = vmatmul.msk.f32.vlgmr.msra.gmra.mxu3 %vm297_vm5, %v507_v3 }
 0x330   :  { %v480_v10 = vpop.permute.xlu0 %479 }
 0x331   :  { %v505_v12 = vsel %vm275_vm3, %v456_v11, %v480_v10 }
 0x332   :  { %1068 = vmatmul.msk.f32.gmra.mxu3 %vm297_vm5, %v508_v9 }
 0x338   :  { %v498_v17 = vpop.permute.xlu0 %497 }
 0x339   :  { %v496_v13 = vpop.permute.xlu1 %495  ;;  %v510_v20 = vsel %vm280_vm4, %v506_v19, %v498_v17 }
 0x33a   :  { %v509_v14 = vsel %vm280_vm4, %v505_v12, %v496_v13 }
 0x33b   :  { %1069 = vmatmul.msk.f32.gmra.mxu3 %vm297_vm5, %v509_v14 }
 0x343   :  { %1070 = vmatmul.msk.f32.gmra.mxu3 %vm297_vm5, %v510_v20 }
 0x3ad   :  { %v552_v22 = vpop.f32.mrf.mxu3 }
 0x3ae   :  { %568 = vrot.lane.b32.xlu1 %v552_v22, %s1165_s12 }
 0x3b5   :  { %v555_v23 = vpop.f32.mrf.mxu3 }
 0x3b6   :  { %570 = vrot.lane.b32.xlu2 %v555_v23, %s1165_s12 }
 0x3be   :  { %v558_v24 = vpop.f32.mrf.mxu3 }
 0x3bf   :  { %572 = vrot.lane.b32.xlu0 %v558_v24, %s1165_s12 }
 0x3c6   :  { %v561_v25 = vpop.f32.mrf.mxu3 }
 0x3c7   :  { %574 = vrot.lane.b32.xlu1 %v561_v25, %s1165_s12 }
 0x410   :  { %v571_v31 = vpop.permute.xlu2 %570 }
 0x411   :  { %582 = vst.msk [vmem:[#allocation2 + $0x8] sm:$0xff] %vm580_vm8, %v571_v31  ;;  %v746_v31 = vld [vmem:[%s1782_s17 + $0x50] sm:$0xff] }
 0x412   :  { %765 = vmatpush.msrb.mxu2 %v746_v31 }
 0x418   :  { %v586_v38 = vld [vmem:[#allocation2 + $0x8] sm:$0xff] }
 0x419   :  { %v594_v41 = vmul.f32 %v1129_v33, %v586_v38  ;;  %v740_v38 = vld [vmem:[%s1782_s17 + $0x20] sm:$0xff] }
 0x41b   :  { %v602_v44 = vadd.f32 %v1130_v37, %v594_v41  ;;  %v737_v41 = vld [vmem:[%s1782_s17 + $0x8] sm:$0xff] }
 0x41d   :  { %v606_v45 = vmax.f32 %v602_v44, 0.0 }
 0x420   :  { %v569_v32 = vpop.permute.xlu1 %568 }
 0x421   :  { %581 = vst.msk [vmem:[#allocation2] sm:$0xff] %vm580_vm8, %v569_v32  ;;  %v745_v32 = vld [vmem:[%s1782_s17 + $0x48] sm:$0xff] }
 0x422   :  { %766 = vmatpush.msrb.mxu2 %v745_v32 }
 0x428   :  { %v585_v34 = vld [vmem:[#allocation2] sm:$0xff] }
 0x429   :  { %v593_v35 = vmul.f32 %v1129_v33, %v585_v34  ;;  %v743_v34 = vld [vmem:[%s1782_s17 + $0x38] sm:$0xff] }
 0x42b   :  { %v601_v39 = vadd.f32 %v1130_v37, %v593_v35  ;;  %v742_v35 = vld [vmem:[%s1782_s17 + $0x30] sm:$0xff] }
 0x42d   :  { %v605_v40 = vmax.f32 %v601_v39, 0.0  ;;  %v739_v39 = vld [vmem:[%s1782_s17 + $0x18] sm:$0xff] }
 0x42f   :  { %1071 = vmatmul.msk.f32.vlgmr.msra.gmra.mxu0 %vm275_vm3, %v605_v40  ;;  %v738_v40 = vld [vmem:[%s1782_s17 + $0x10] sm:$0xff] }
 0x431   :  { %v573_v43 = vpop.permute.xlu0 %572 }
 0x432   :  { %583 = vst.msk [vmem:[#allocation2 + $0x10] sm:$0xff] %vm580_vm8, %v573_v43  ;;  %v736_v43 = vld [vmem:[%s1782_s17] sm:$0xff] }
 0x437   :  { %1072 = vmatmul.msk.f32.gmra.mxu0 %vm275_vm3, %v606_v45 }
 0x439   :  { %v575_v46 = vpop.permute.xlu1 %574  ;;  %v587_v47 = vld [vmem:[#allocation2 + $0x10] sm:$0xff] }
 0x43a   :  { %584 = vst.msk [vmem:[#allocation2 + $0x18] sm:$0xff] %vm580_vm8, %v575_v46  ;;  %v595_v48 = vmul.f32 %v1129_v33, %v587_v47 }
 0x43c   :  { %v603_v49 = vadd.f32 %v1130_v37, %v595_v48 }
 0x43e   :  { %v607_v50 = vmax.f32 %v603_v49, 0.0 }
 0x440   :  { %1073 = vmatmul.msk.f32.gmra.mxu0 %vm275_vm3, %v607_v50 }
 0x441   :  { %v588_v51 = vld [vmem:[#allocation2 + $0x18] sm:$0xff] }
 0x442   :  { %v596_v52 = vmul.f32 %v1129_v33, %v588_v51  ;;  %v744_v33 = vld [vmem:[%s1782_s17 + $0x40] sm:$0xff] }
 0x443   :  { %767 = vmatpush.msrb.mxu2 %v744_v33 }
 0x444   :  { %v604_v54 = vadd.f32 %v1130_v37, %v596_v52  ;;  %v741_v37 = vld [vmem:[%s1782_s17 + $0x28] sm:$0xff] }
 0x445   :  { %768 = vmatpush.msrb.mxu2 %v743_v34 }
 0x446   :  { %v608_v55 = vmax.f32 %v604_v54, 0.0 }
 0x447   :  { %769 = vmatpush.msrb.mxu2 %v742_v35 }
 0x448   :  { %1074 = vmatmul.msk.f32.gmra.mxu0 %vm275_vm3, %v608_v55 }
 0x449   :  { %770 = vmatpush.msrb.mxu2 %v741_v37 }
 0x44b   :  { %771 = vmatpush.msrb.mxu2 %v740_v38 }
 0x44d   :  { %772 = vmatpush.msrb.mxu2 %v739_v39  ;;  %v1134_v39 = vld [vmem:[%s1786_s21] ss:$0 sm:$0xff]  ;;  %s1169_s21 = smov 8  }
 0x44f   :  { %773 = vmatpush.msrb.mxu2 %v738_v40 }
 0x451   :  { %774 = vmatpush.msrb.mxu2 %v737_v41 }
 0x453   :  { %775 = vmatpush.msrb.mxu2 %v736_v43 }
 0x4ac   :  { %v646_v57 = vpop.f32.mrf.mxu0 }
 0x4ad   :  { %v647_v58 = vadd.f32 %v1131_v56, %v646_v57 }
 0x4af   :  { %v658_v59 = vmax.f32 %v647_v58, 0.0 }
 0x4b1   :  { %700 = vrot.lane.b32.xlu2 %v658_v59, %s1162_s28  ;;  %v668_v0 = vrot.slane %v658_v59, 7  ;;  %v683_v1 = vrot.slane %v658_v59, 1 }
 0x4b4   :  { %v649_v61 = vpop.f32.mrf.mxu0 }
 0x4b5   :  { %v650_v62 = vadd.f32 %v1131_v56, %v649_v61 }
 0x4b7   :  { %v659_v63 = vmax.f32 %v650_v62, 0.0 }
 0x4b9   :  { %v669_v2 = vrot.slane %v659_v63, 7  ;;  %v684_v3 = vrot.slane %v659_v63, 1  ;;  %702 = vrot.lane.b32.xlu1 %v659_v63, %s1162_s28 }
 0x4bb   :  { %v685_v5 = vsel %vm209_vm2, %v683_v1, %v684_v3  ;;  %v670_v6 = vsel %vm173_vm1, %v668_v0, %v669_v2 }
 0x4bc   :  { %v696_v7 = vmul.f32 %v685_v5, %v1350_v42  ;;  %v680_v50 = vmul.f32 %v670_v6, %v1422_v21 }
 0x4bd   :  { %v652_v8 = vpop.f32.mrf.mxu0 }
 0x4be   :  { %v653_v9 = vadd.f32 %v1131_v56, %v652_v8  ;;  %716 = vrot.lane.b32.xlu0 %v696_v7, %s1163_s29  ;;  %v838_v7 = vld [vmem:[%s1785_s20 + $0x20] sm:$0xff]  ;;  %v837_v8 = vld [vmem:[%s1785_s20 + $0x18] sm:$0xff] }
 0x4bf   :  { %867 = vmatpush.msrb.mxu1 %v838_v7 }
 0x4c0   :  { %v660_v10 = vmax.f32 %v653_v9, 0.0  ;;  %v836_v9 = vld [vmem:[%s1785_s20 + $0x10] sm:$0xff] }
 0x4c1   :  { %868 = vmatpush.msrb.mxu1 %v837_v8 }
 0x4c2   :  { %v671_v11 = vrot.slane %v660_v10, 7  ;;  %v686_v12 = vrot.slane %v660_v10, 1 }
 0x4c3   :  { %869 = vmatpush.msrb.mxu1 %v836_v9 }
 0x4c4   :  { %v687_v13 = vsel %vm209_vm2, %v684_v3, %v686_v12  ;;  %v672_v14 = vsel %vm173_vm1, %v669_v2, %v671_v11 }
 0x4c5   :  { %v655_v15 = vpop.f32.mrf.mxu0  ;;  %v697_v16 = vmul.f32 %v687_v13, %v1360_v53 }
 0x4c6   :  { %v656_v17 = vadd.f32 %v1131_v56, %v655_v15  ;;  %704 = vrot.lane.b32.xlu0 %v660_v10, %s1162_s28  ;;  %v681_v56 = vmul.f32 %v672_v14, %v1430_v29  ;;  %v835_v10 = vld [vmem:[%s1785_s20 + $0x8] sm:$0xff]  ;;  %v1132_v14 = vld [vmem:[%s1783_s18] ss:$0 sm:$0xff] }
 0x4c7   :  { %718 = vrot.lane.b32.xlu2 %v697_v16, %s1163_s29  ;;  %870 = vmatpush.msrb.mxu1 %v835_v10  ;;  %v973_v10 = vld [vmem:[%s1787_s22 + $0x50] sm:$0xff] }
 0x4c8   :  { %v661_v19 = vmax.f32 %v656_v17, 0.0  ;;  %v1133_v17 = vld [vmem:[%s1784_s19] ss:$0 sm:$0xff]  ;;  %s1043_s19 = sshll.u32 %s1788_s23, 4  ;;  %s1044_s19 = int_to_ptr.hbm [resolvable:$true] %s1043_s19 }
 0x4ca   :  { %v663_v20 = vrot.slane %v661_v19, 7  ;;  %v688_v22 = vrot.slane %v661_v19, 1 }
 0x4cc   :  { %v695_v23 = vsel %vm209_vm2, %v688_v22, %v683_v1  ;;  %v689_v24 = vsel %vm209_vm2, %v686_v12, %v688_v22  ;;  %v678_v25 = vsel %vm173_vm1, %v663_v20, %v668_v0  ;;  %v673_v26 = vsel %vm173_vm1, %v671_v11, %v663_v20  ;;  %v834_v11 = vld [vmem:[%s1785_s20] sm:$0xff]  ;;  %s1168_s20 = smov 128  }
 0x4cd   :  { %v699_v27 = vmul.f32 %v695_v23, %v1379_v4  ;;  %v698_v28 = vmul.f32 %v689_v24, %v1368_v60  ;;  %v679_v45 = vmul.f32 %v678_v25, %v1419_v18  ;;  %v682_v62 = vmul.f32 %v673_v26, %v1439_v36  ;;  %871 = vmatpush.msrb.mxu1 %v834_v11  ;;  %v970_v11 = vld [vmem:[%s1787_s22 + $0x38] sm:$0xff] }
 0x4cf   :  { %706 = vrot.lane.b32.xlu2 %v661_v19, %s1162_s28  ;;  %722 = vrot.lane.b32.xlu0 %v699_v27, %s1163_s29 }
 0x4d0   :  { %720 = vrot.lane.b32.xlu1 %v698_v28, %s1163_s29 }
 0x50b   :  { %v701_v44 = vpop.permute.xlu2 %700 }
 0x50c   :  { %v728_v46 = vsel %vm275_vm3, %v679_v45, %v701_v44 }
 0x521   :  { %v719_v52 = vpop.permute.xlu2 %718 }
 0x529   :  { %v707_v61 = vpop.permute.xlu2 %706 }
 0x52a   :  { %v731_v0 = vsel %vm275_vm3, %v682_v62, %v707_v61 }
 0x52b   :  { %v703_v49 = vpop.permute.xlu1 %702 }
 0x52c   :  { %v729_v51 = vsel %vm275_vm3, %v680_v50, %v703_v49 }
 0x52d   :  { %v733_v54 = vsel %vm280_vm4, %v729_v51, %v719_v52 }
 0x530   :  { %v717_v47 = vpop.permute.xlu0 %716 }
 0x531   :  { %v732_v48 = vsel %vm280_vm4, %v728_v46, %v717_v47 }
 0x532   :  { %1075 = vmatmul.msk.f32.vlgmr.msrb.gmra.mxu2 %vm297_vm5, %v732_v48 }
 0x538   :  { %v705_v55 = vpop.permute.xlu0 %704 }
 0x539   :  { %v730_v57 = vsel %vm275_vm3, %v681_v56, %v705_v55 }
 0x53a   :  { %1076 = vmatmul.msk.f32.gmra.mxu2 %vm297_vm5, %v733_v54 }
 0x541   :  { %v723_v63 = vpop.permute.xlu0 %722 }
 0x542   :  { %v721_v58 = vpop.permute.xlu1 %720  ;;  %v735_v1 = vsel %vm280_vm4, %v731_v0, %v723_v63 }
 0x543   :  { %v734_v59 = vsel %vm280_vm4, %v730_v57, %v721_v58 }
 0x544   :  { %1077 = vmatmul.msk.f32.gmra.mxu2 %vm297_vm5, %v734_v59 }
 0x54c   :  { %1078 = vmatmul.msk.f32.gmra.mxu2 %vm297_vm5, %v735_v1 }
 0x5b5   :  { %v777_v2 = vpop.f32.mrf.mxu2 }
 0x5b6   :  { %793 = vrot.lane.b32.xlu1 %v777_v2, %s1162_s28 }
 0x5bd   :  { %v780_v3 = vpop.f32.mrf.mxu2 }
 0x5be   :  { %795 = vrot.lane.b32.xlu2 %v780_v3, %s1162_s28 }
 0x5c7   :  { %v783_v5 = vpop.f32.mrf.mxu2 }
 0x5c8   :  { %797 = vrot.lane.b32.xlu0 %v783_v5, %s1162_s28 }
 0x5cf   :  { %v786_v6 = vpop.f32.mrf.mxu2 }
 0x5d0   :  { %799 = vrot.lane.b32.xlu1 %v786_v6, %s1162_s28 }
 0x618   :  { %v796_v12 = vpop.permute.xlu2 %795 }
 0x619   :  { %807 = vst.msk [vmem:[#allocation2 + $0x8] sm:$0xff] %vm805_vm9, %v796_v12  ;;  %v969_v12 = vld [vmem:[%s1787_s22 + $0x30] sm:$0xff] }
 0x620   :  { %v811_v19 = vld [vmem:[#allocation2 + $0x8] sm:$0xff] }
 0x621   :  { %v819_v23 = vmul.f32 %v1132_v14, %v811_v19  ;;  %v963_v19 = vld [vmem:[%s1787_s22] sm:$0xff] }
 0x623   :  { %v827_v24 = vadd.f32 %v1133_v17, %v819_v23 }
 0x625   :  { %v831_v26 = vmax.f32 %v827_v24, 0.0 }
 0x628   :  { %v794_v13 = vpop.permute.xlu1 %793 }
 0x629   :  { %806 = vst.msk [vmem:[#allocation2] sm:$0xff] %vm805_vm9, %v794_v13  ;;  %v968_v13 = vld [vmem:[%s1787_s22 + $0x28] sm:$0xff] }
 0x630   :  { %v810_v15 = vld [vmem:[#allocation2] sm:$0xff] }
 0x631   :  { %v818_v16 = vmul.f32 %v1132_v14, %v810_v15  ;;  %v966_v15 = vld [vmem:[%s1787_s22 + $0x18] sm:$0xff] }
 0x633   :  { %v826_v20 = vadd.f32 %v1133_v17, %v818_v16  ;;  %v965_v16 = vld [vmem:[%s1787_s22 + $0x10] sm:$0xff] }
 0x635   :  { %v830_v22 = vmax.f32 %v826_v20, 0.0 }
 0x637   :  { %1079 = vmatmul.msk.f32.vlgmr.msrb.gmra.mxu1 %vm843_vm10, %v830_v22 }
 0x63a   :  { %v798_v25 = vpop.permute.xlu0 %797 }
 0x63b   :  { %808 = vst.msk [vmem:[#allocation2 + $0x10] sm:$0xff] %vm805_vm9, %v798_v25 }
 0x63f   :  { %1080 = vmatmul.msk.f32.gmra.mxu1 %vm843_vm10, %v831_v26 }
 0x642   :  { %v800_v27 = vpop.permute.xlu1 %799  ;;  %v812_v28 = vld [vmem:[#allocation2 + $0x10] sm:$0xff] }
 0x643   :  { %809 = vst.msk [vmem:[#allocation2 + $0x18] sm:$0xff] %vm805_vm9, %v800_v27  ;;  %v820_v30 = vmul.f32 %v1132_v14, %v812_v28 }
 0x645   :  { %v828_v31 = vadd.f32 %v1133_v17, %v820_v30 }
 0x647   :  { %v832_v32 = vmax.f32 %v828_v31, 0.0 }
 0x649   :  { %1081 = vmatmul.msk.f32.gmra.mxu1 %vm843_vm10, %v832_v32 }
 0x64a   :  { %v813_v33 = vld [vmem:[#allocation2 + $0x18] sm:$0xff] }
 0x64b   :  { %v821_v34 = vmul.f32 %v1132_v14, %v813_v33  ;;  %v967_v14 = vld [vmem:[%s1787_s22 + $0x20] sm:$0xff] }
 0x64d   :  { %v829_v35 = vadd.f32 %v1133_v17, %v821_v34  ;;  %v964_v17 = vld [vmem:[%s1787_s22 + $0x8] sm:$0xff] }
 0x64f   :  { %v833_v37 = vmax.f32 %v829_v35, 0.0 }
 0x651   :  { %1082 = vmatmul.msk.f32.gmra.mxu1 %vm843_vm10, %v833_v37 }
 0x6b4   :  { %v873_v38 = vpop.f32.mrf.mxu1 }
 0x6b5   :  { %v874_v40 = vadd.f32 %v1134_v39, %v873_v38 }
 0x6b7   :  { %v885_v43 = vmax.f32 %v874_v40, 0.0 }
 0x6b9   :  { %v895_v46 = vrot.slane %v885_v43, 7 }
 0x6bc   :  { %v876_v41 = vpop.f32.mrf.mxu1 }
 0x6bd   :  { %v877_v44 = vadd.f32 %v1134_v39, %v876_v41 }
 0x6bf   :  { %v886_v45 = vmax.f32 %v877_v44, 0.0 }
 0x6c1   :  { %v896_v47 = vrot.slane %v886_v45, 7  ;;  %929 = vrot.lane.b32.xlu2 %v886_v45, %s1162_s28  ;;  %v911_v52 = vrot.slane %v886_v45, 1 }
 0x6c3   :  { %v1683_v48 = vsel %vm173_vm1, %v895_v46, %v896_v47 }
 0x6c4   :  { %v907_v22 = vmul.f32 %v1683_v48, %v1422_v21 }
 0x6c6   :  { %v879_v49 = vpop.f32.mrf.mxu1 }
 0x6c7   :  { %v880_v50 = vadd.f32 %v1134_v39, %v879_v49 }
 0x6c9   :  { %v887_v51 = vmax.f32 %v880_v50, 0.0 }
 0x6cb   :  { %v898_v54 = vrot.slane %v887_v51, 7  ;;  %v913_v55 = vrot.slane %v887_v51, 1  ;;  %931 = vrot.lane.b32.xlu1 %v887_v51, %s1162_s28 }
 0x6cd   :  { %v914_v56 = vsel %vm209_vm2, %v911_v52, %v913_v55  ;;  %v1688_v57 = vsel %vm173_vm1, %v896_v47, %v898_v54 }
 0x6ce   :  { %v882_v58 = vpop.f32.mrf.mxu1  ;;  %v924_v59 = vmul.f32 %v914_v56, %v1360_v53  ;;  %v910_v53 = vrot.slane %v885_v43, 1  ;;  %v908_v28 = vmul.f32 %v1688_v57, %v1430_v29 }
 0x6cf   :  { %v883_v61 = vadd.f32 %v1134_v39, %v882_v58 }
 0x6d0   :  { %945 = vrot.lane.b32.xlu0 %v924_v59, %s1163_s29  ;;  %v912_v7 = vsel %vm209_vm2, %v910_v53, %v911_v52 }
 0x6d1   :  { %v888_v62 = vmax.f32 %v883_v61, 0.0  ;;  %v923_v9 = vmul.f32 %v912_v7, %v1350_v42  ;;  %v971_v42 = vld [vmem:[%s1787_s22 + $0x40] sm:$0xff] }
 0x6d3   :  { %v890_v63 = vrot.slane %v888_v62, 7  ;;  %v915_v0 = vrot.slane %v888_v62, 1  ;;  %933 = vrot.lane.b32.xlu1 %v888_v62, %s1162_s28 }
 0x6d5   :  { %v916_v1 = vsel %vm209_vm2, %v913_v55, %v915_v0  ;;  %v1695_v2 = vsel %vm173_vm1, %v898_v54, %v890_v63  ;;  %v905_v3 = vsel %vm173_vm1, %v890_v63, %v895_v46  ;;  %v922_v6 = vsel %vm209_vm2, %v915_v0, %v910_v53 }
 0x6d6   :  { %v925_v5 = vmul.f32 %v916_v1, %v1368_v60  ;;  %v926_v8 = vmul.f32 %v922_v6, %v1379_v4  ;;  %v974_v60 = vld [vmem:[%s1787_s22 + $0x58] sm:$0xff]  ;;  %v972_v4 = vld [vmem:[%s1787_s22 + $0x48] sm:$0xff]  ;;  %v906_v31 = vmul.f32 %v905_v3, %v1419_v18  ;;  %v909_v29 = vmul.f32 %v1695_v2, %v1439_v36  ;;  %s1166_s22 = smov 40  }
 0x6d7   :  { %1099 = vmatpush.msrb.mxu3 %v974_v60  ;;  %991 = vmatpush.msra.mxu2 %v974_v60 }
 0x6d8   :  { %927 = vrot.lane.b32.xlu0 %v885_v43, %s1162_s28  ;;  %947 = vrot.lane.b32.xlu2 %v925_v5, %s1163_s29 }
 0x6d9   :  { %1100 = vmatpush.msrb.mxu3 %v973_v10  ;;  %992 = vmatpush.msra.mxu2 %v973_v10 }
 0x6db   :  { %1101 = vmatpush.msrb.mxu3 %v972_v4  ;;  %993 = vmatpush.msra.mxu2 %v972_v4 }
 0x6dd   :  { %1102 = vmatpush.msrb.mxu3 %v971_v42  ;;  %994 = vmatpush.msra.mxu2 %v971_v42 }
 0x6df   :  { %1103 = vmatpush.msrb.mxu3 %v970_v11  ;;  %995 = vmatpush.msra.mxu2 %v970_v11 }
 0x6e0   :  { %949 = vrot.lane.b32.xlu0 %v926_v8, %s1163_s29  ;;  %943 = vrot.lane.b32.xlu2 %v923_v9, %s1163_s29 }
 0x6e1   :  { %1104 = vmatpush.msrb.mxu3 %v969_v12  ;;  %996 = vmatpush.msra.mxu2 %v969_v12 }
 0x6e3   :  { %1105 = vmatpush.msrb.mxu3 %v968_v13  ;;  %997 = vmatpush.msra.mxu2 %v968_v13 }
 0x6e5   :  { %1106 = vmatpush.msrb.mxu3 %v967_v14  ;;  %998 = vmatpush.msra.mxu2 %v967_v14 }
 0x6e7   :  { %1107 = vmatpush.msrb.mxu3 %v966_v15  ;;  %999 = vmatpush.msra.mxu2 %v966_v15 }
 0x6e9   :  { %1108 = vmatpush.msrb.mxu3 %v965_v16  ;;  %1000 = vmatpush.msra.mxu2 %v965_v16 }
 0x6eb   :  { %1109 = vmatpush.msrb.mxu3 %v964_v17  ;;  %1001 = vmatpush.msra.mxu2 %v964_v17 }
 0x6ed   :  { %1110 = vmatpush.msrb.mxu3 %v963_v19  ;;  %1002 = vmatpush.msra.mxu2 %v963_v19 }
 0x71b   :  { %v930_v20 = vpop.permute.xlu2 %929 }
 0x71c   :  { %v956_v24 = vsel %vm275_vm3, %v907_v22, %v930_v20 }
 0x732   :  { %v948_v23 = vpop.permute.xlu2 %947 }
 0x73a   :  { %v944_v33 = vpop.permute.xlu2 %943 }
 0x73d   :  { %v932_v27 = vpop.permute.xlu1 %931 }
 0x73e   :  { %v957_v30 = vsel %vm275_vm3, %v908_v28, %v932_v27 }
 0x73f   :  { %v961_v34 = vsel %vm280_vm4, %v957_v30, %v948_v23 }
 0x742   :  { %v946_v25 = vpop.permute.xlu0 %945 }
 0x743   :  { %v960_v26 = vsel %vm280_vm4, %v956_v24, %v946_v25 }
 0x744   :  { %1084 = vmatmul.msk.f32.vlgmr.msrb.gmra.mxu3 %vm297_vm5, %v960_v26 }
 0x745   :  { %v934_v37 = vpop.permute.xlu1 %933 }
 0x746   :  { %v958_v38 = vsel %vm275_vm3, %v909_v29, %v934_v37 }
 0x74a   :  { %v928_v32 = vpop.permute.xlu0 %927 }
 0x74b   :  { %v955_v21 = vsel %vm275_vm3, %v906_v31, %v928_v32 }
 0x74c   :  { %v959_v35 = vsel %vm280_vm4, %v955_v21, %v944_v33  ;;  %1085 = vmatmul.msk.f32.gmra.mxu3 %vm297_vm5, %v961_v34 }
 0x74d   :  { %1083 = vmatmul.msk.f32.vlgmr.msra.gmra.mxu2 %vm297_vm5, %v959_v35 }
 0x752   :  { %v950_v39 = vpop.permute.xlu0 %949 }
 0x753   :  { %v962_v18 = vsel %vm280_vm4, %v958_v38, %v950_v39 }
 0x754   :  { %1086 = vmatmul.msk.f32.gmra.mxu3 %vm297_vm5, %v962_v18 }
 0x7c7   :  { %v1007_v40 = vpop.f32.mrf.mxu3 }
 0x7c8   :  { %1022 = vrot.lane.b32.xlu2 %v1007_v40, %s1166_s22 }
 0x7cf   :  { %v1010_v41 = vpop.f32.mrf.mxu3 }
 0x7d0   :  { %v1004_v43 = vpop.f32.mrf.mxu2  ;;  %1024 = vrot.lane.b32.xlu0 %v1010_v41, %s1166_s22 }
 0x7d1   :  { %1020 = vrot.lane.b32.xlu1 %v1004_v43, %s1166_s22 }
 0x7d7   :  { %v1013_v44 = vpop.f32.mrf.mxu3 }
 0x7d9   :  { %1026 = vrot.lane.b32.xlu1 %v1013_v44, %s1166_s22 }
 0x822   :  { %v1023_v45 = vpop.permute.xlu2 %1022 }
 0x823   :  { %1034 = vst.msk [vmem:[#allocation2 + $0x8] sm:$0xff] %vm1032_vm11, %v1023_v45 }
 0x842   :  { %v1025_v36 = vpop.permute.xlu0 %1024 }
 0x843   :  { %1035 = vst.msk [vmem:[#allocation2 + $0x10] sm:$0xff] %vm1032_vm11, %v1025_v36  ;;  %v1021_v46 = vpop.permute.xlu1 %1020 }
 0x844   :  { %1033 = vst.msk [vmem:[#allocation2] sm:$0xff] %vm1032_vm11, %v1021_v46 }
 0x84b   :  { %v1027_v47 = vpop.permute.xlu1 %1026 }
 0x84c   :  { %1036 = vst.msk [vmem:[#allocation2 + $0x18] sm:$0xff] %vm1032_vm11, %v1027_v47 }
 0x84d   :  { %1049 = dma.vmem_to_hbm [thread:$0]  %s1042_s26, 512, %s1044_s19, [#allocation3], %s1168_s20, %s1168_s20, %s1169_s21  }
 0x84e   :  { %1159 = dma.done.wait [#allocation3], 512  }
 0x84f   :  { %1160 = vsyncadd [#allocation3], 4294966784 }
 0x850   :  { %1054 = vsyncpa [#allocation3], 1 }

</bundles_post_ra>
